<compile_context>
chip_gen: v7x
topology: tpu7x:2x2x1
jax: 0.10.0
libtpu: 0.0.40
codegen_flags: <defaults>
</compile_context>

<pallas_src>
import functools

import jax
import jax.numpy as jnp
from jax.experimental import pallas as pl
from jax.experimental.pallas import tpu as pltpu


def _ln_kernel(x_ref, w_ref, b_ref, o_ref, *, eps):
    # Unpacked path: each row of the (tm, C) tile is one feature vector.
    x = x_ref[...].astype(jnp.float32)
    w = w_ref[...].astype(jnp.float32)
    b = b_ref[...].astype(jnp.float32)

    mu = jnp.mean(x, axis=-1, keepdims=True)          # XLU cross-lane reduce
    d = x - mu
    var = jnp.mean(d * d, axis=-1, keepdims=True)     # two-pass: always >= 0
    inv = jax.lax.rsqrt(var + eps)                    # EUP
    o_ref[...] = (d * inv * w + b).astype(o_ref.dtype)


def _ln_kernel_packed(x_ref, w_ref, b_ref, seg_ref, o_ref, *, eps):
    # Packed path: each row of the (tm, Cp) tile holds k independent feature
    # vectors of length C packed along the lane axis (Cp = k*C).
    # seg_ref: (Cp, Cp) block-diagonal matrix with entries 1/C inside each
    # length-C segment, hoisted to the wrapper and DMA'd once (constant block
    # index).  x @ seg broadcasts each segment's mean onto every lane of that
    # segment using the otherwise-idle MXU.
    x = x_ref[...].astype(jnp.float32)
    w = w_ref[...].astype(jnp.float32)
    b = b_ref[...].astype(jnp.float32)
    seg = seg_ref[...]

    mu = jnp.dot(x, seg, preferred_element_type=jnp.float32)
    d = x - mu
    var = jnp.dot(d * d, seg, preferred_element_type=jnp.float32)
    inv = jax.lax.rsqrt(var + eps)
    o_ref[...] = (d * inv * w + b).astype(o_ref.dtype)


def withbias_layernorm(x, weight, bias, *, eps=1e-5, tm=None):
    """x: (..., C); weight, bias: (C,). Returns LayerNorm(x) with eps=1e-5."""
    orig_shape = x.shape
    C = int(orig_shape[-1])
    x2d = x.reshape(-1, C)               # pure reshape (no copy)
    N = x2d.shape[0]

    itemsize = jnp.dtype(x.dtype).itemsize
    sub = 8 * max(1, 4 // itemsize)      # sublane multiple: 8 f32, 16 bf16, 32 int8

    # Lane packing: if C underfills the 128-lane vreg, pack k rows per packed
    # row.  k is the largest power of two dividing both 128//C and N, so the
    # (N, C) -> (N//k, k*C) reshape stays a zero-copy reshape even when N is
    # not a multiple of 128//C (partial packing instead of a full fallback).
    k = 1
    if C < 128 and 128 % C == 0:
        k = 128 // C
        while k > 1 and N % k != 0:
            k //= 2
    Np, Cp = N // k, C * k
    x2d = x2d.reshape(Np, Cp)                      # still a pure reshape
    w2d = jnp.tile(weight.reshape(1, C), (1, k))   # (1, Cp)
    b2d = jnp.tile(bias.reshape(1, C), (1, k))     # (1, Cp)

    # Row tile: sized from a VMEM budget covering the double-buffered DMA
    # tiles (in + out) plus the in-kernel f32 working set (x, d, d*d, out),
    # so it stays safely inside v7x's 32 MiB scoped VMEM while using the
    # headroom available on v5e/v6e.  No artificial 1024-row cap.
    if tm is None:
        dma_per_row = 2 * 2 * Cp * itemsize        # double-buffered in + out
        f32_per_row = 4 * Cp * 4                   # f32 intermediates
        budget = 20 * 1024 * 1024
        tm = budget // max(dma_per_row + f32_per_row, 1)
        tm = min(tm, 4096)
    tm = max(sub, (tm // sub) * sub)

    # Keep >= ~4 grid blocks on large inputs so v7x's two TensorCores can
    # shard the "parallel" axis and each core still has >=2 steps to pipeline.
    if Np >= 4 * sub:
        tm = min(tm, max(sub, (pl.cdiv(Np, 4) // sub) * sub))

    # Never let the block exceed the row count; tiny inputs get one full block
    # (block dim == array dim is always legal).  Otherwise tm stays a sublane
    # multiple and the uneven last block's OOB rows are independent garbage
    # whose output writes are dropped (documented contract, rows independent).
    if Np <= sub:
        tm = Np
    else:
        tm = min(tm, (Np // sub) * sub)

    grid = (pl.cdiv(Np, tm),)

    common_specs = [
        pl.BlockSpec((tm, Cp), lambda i: (i, 0)),
        pl.BlockSpec((1, Cp), lambda i: (0, 0)),
        pl.BlockSpec((1, Cp), lambda i: (0, 0)),
    ]

    if k > 1:
        # Block-diagonal segment matrix with 1/C folded in (C is a power of
        # two here, so 1/C is exact).  Hoisted out of the kernel; constant
        # block index => fetched into VMEM exactly once.
        lane = jnp.arange(Cp, dtype=jnp.int32)
        seg = ((lane[:, None] // C) == (lane[None, :] // C)).astype(jnp.float32)
        seg = seg * jnp.float32(1.0 / C)
        kernel = functools.partial(_ln_kernel_packed, eps=eps)
        in_specs = common_specs + [pl.BlockSpec((Cp, Cp), lambda i: (0, 0))]
        args = (x2d, w2d, b2d, seg)
    else:
        kernel = functools.partial(_ln_kernel, eps=eps)
        in_specs = common_specs
        args = (x2d, w2d, b2d)

    out = pl.pallas_call(
        kernel,
        out_shape=jax.ShapeDtypeStruct((Np, Cp), x.dtype),
        grid_spec=pltpu.PrefetchScalarGridSpec(
            num_scalar_prefetch=0,
            grid=grid,
            in_specs=in_specs,
            out_specs=pl.BlockSpec((tm, Cp), lambda i: (i, 0)),
        ),
        compiler_params=pltpu.CompilerParams(
            dimension_semantics=("parallel",),
            vmem_limit_bytes=32 * 1024 * 1024,
        ),
    )(*args)

    return out.reshape(orig_shape)


if __name__ == "__main__":
    key = jax.random.PRNGKey(0)
    B, L, C = 2, 16, 32  # batch=2, seq=16, hidden=32
    x = jax.random.normal(key, (B, L, C), dtype=jnp.float32)

    # Deterministic parameter init per WithBias_LayerNorm.__init__:
    weight = jnp.ones((C,), dtype=jnp.float32)
    bias = jnp.zeros((C,), dtype=jnp.float32)

    out = withbias_layernorm(x, weight, bias)
    out = jax.block_until_ready(out)

    # Pure-JAX reference (same math as the PyTorch forward, unbiased=False).
    mu = jnp.mean(x, axis=-1, keepdims=True)
    var = jnp.mean((x - mu) ** 2, axis=-1, keepdims=True)
    ref = (x - mu) / jnp.sqrt(var + 1e-5) * weight + bias
    assert jnp.allclose(out, ref, atol=1e-5, rtol=1e-5), "mismatch vs reference"

    print("KERNEL_OK")
</pallas_src>

<mosaic_0001>
module attributes {stable_mosaic.version = 11 : i64} {
  func.func @_ln_kernel_packed(%arg0: i32, %arg1: memref<8x128xf32, #tpu.memory_space<vmem>>, %arg2: memref<1x128xf32, #tpu.memory_space<vmem>>, %arg3: memref<1x128xf32, #tpu.memory_space<vmem>>, %arg4: memref<128x128xf32, #tpu.memory_space<vmem>>, %arg5: memref<8x128xf32, #tpu.memory_space<vmem>>) attributes {dimension_semantics = [#tpu.dimension_semantics<parallel>], iteration_bounds = array<i64: 1>, scalar_prefetch = 0 : i64, scratch_operands = 0 : i64, tpu.core_type = #tpu.core_type<tc>, window_params = [{transform_indices = @transform_0, window_bounds = array<i64: 8, 128>}, {pipeline_mode = #tpu.pipeline_mode<synchronous>, transform_indices = @transform_1, window_bounds = array<i64: 1, 128>}, {pipeline_mode = #tpu.pipeline_mode<synchronous>, transform_indices = @transform_2, window_bounds = array<i64: 1, 128>}, {pipeline_mode = #tpu.pipeline_mode<synchronous>, transform_indices = @transform_3, window_bounds = array<i64: 128, 128>}, {transform_indices = @transform_4, window_bounds = array<i64: 8, 128>}]} {
    %c0 = arith.constant 0 : index
    %c0_0 = arith.constant 0 : index
    %0 = vector.load %arg1[%c0, %c0_0] : memref<8x128xf32, #tpu.memory_space<vmem>>, vector<8x128xf32>
    %c0_1 = arith.constant 0 : index
    %c0_2 = arith.constant 0 : index
    %1 = vector.load %arg2[%c0_1, %c0_2] : memref<1x128xf32, #tpu.memory_space<vmem>>, vector<1x128xf32>
    %c0_3 = arith.constant 0 : index
    %c0_4 = arith.constant 0 : index
    %2 = vector.load %arg3[%c0_3, %c0_4] : memref<1x128xf32, #tpu.memory_space<vmem>>, vector<1x128xf32>
    %c0_5 = arith.constant 0 : index
    %c0_6 = arith.constant 0 : index
    %3 = vector.load %arg4[%c0_5, %c0_6] : memref<128x128xf32, #tpu.memory_space<vmem>>, vector<128x128xf32>
    %cst = arith.constant dense<0.000000e+00> : vector<8x128xf32>
    %4 = tpu.matmul %0, %3, %cst {dimension_numbers = #tpu.dot_dimension_numbers<[1], [0], [0], [1], [0, 0, 1, 1], [], []>} : vector<8x128xf32>, vector<128x128xf32>, vector<8x128xf32> -> vector<8x128xf32>
    %5 = arith.subf %0, %4 : vector<8x128xf32>
    %6 = arith.mulf %5, %5 : vector<8x128xf32>
    %cst_7 = arith.constant dense<0.000000e+00> : vector<8x128xf32>
    %7 = tpu.matmul %6, %3, %cst_7 {dimension_numbers = #tpu.dot_dimension_numbers<[1], [0], [0], [1], [0, 0, 1, 1], [], []>} : vector<8x128xf32>, vector<128x128xf32>, vector<8x128xf32> -> vector<8x128xf32>
    %cst_8 = arith.constant 9.99999974E-6 : f32
    %8 = vector.broadcast %cst_8 : f32 to vector<8x128xf32>
    %9 = arith.addf %7, %8 : vector<8x128xf32>
    %10 = math.rsqrt %9 : vector<8x128xf32>
    %11 = arith.mulf %5, %10 : vector<8x128xf32>
    %12 = vector.broadcast %1 : vector<1x128xf32> to vector<8x128xf32>
    %13 = arith.mulf %11, %12 : vector<8x128xf32>
    %14 = vector.broadcast %2 : vector<1x128xf32> to vector<8x128xf32>
    %15 = arith.addf %13, %14 : vector<8x128xf32>
    %c0_9 = arith.constant 0 : index
    %c0_10 = arith.constant 0 : index
    %16 = vector.load %arg5[%c0_9, %c0_10] : memref<8x128xf32, #tpu.memory_space<vmem>>, vector<8x128xf32>
    tpu.vector_store %arg5[%c0_9, %c0_10], %15 {strides = array<i32>} : memref<8x128xf32, #tpu.memory_space<vmem>>, vector<8x128xf32>,
    return
  }
  func.func @transform_0(%arg0: i32) -> (i32, i32) {
    %c0_i32 = arith.constant 0 : i32
    %c0_i32_0 = arith.constant 0 : i32
    return %arg0, %c0_i32 : i32, i32
  }
  func.func @transform_1(%arg0: i32) -> (i32, i32) {
    %c0_i32 = arith.constant 0 : i32
    %c0_i32_0 = arith.constant 0 : i32
    %c0_i32_1 = arith.constant 0 : i32
    return %c0_i32, %c0_i32_0 : i32, i32
  }
  func.func @transform_2(%arg0: i32) -> (i32, i32) {
    %c0_i32 = arith.constant 0 : i32
    %c0_i32_0 = arith.constant 0 : i32
    %c0_i32_1 = arith.constant 0 : i32
    return %c0_i32, %c0_i32_0 : i32, i32
  }
  func.func @transform_3(%arg0: i32) -> (i32, i32) {
    %c0_i32 = arith.constant 0 : i32
    %c0_i32_0 = arith.constant 0 : i32
    %c0_i32_1 = arith.constant 0 : i32
    return %c0_i32, %c0_i32_0 : i32, i32
  }
  func.func @transform_4(%arg0: i32) -> (i32, i32) {
    %c0_i32 = arith.constant 0 : i32
    %c0_i32_0 = arith.constant 0 : i32
    return %arg0, %c0_i32 : i32, i32
  }
}

</mosaic_0001>

<bundles_post_ra>
// kernel: tpu_custom_call.1
= control target key start
LH: loop header
LB: loop body
LE: loop exit
PB: predicated region body
PF: predicated region fallthrough
CT: control target
= control target key end

     0   :  { %9 = vsyncpa [#allocation3], 0  ;;  %s556_s0 = inlined_call_operand.hbm [shape: f32[8,128], index: 0, kind: input, shape index: {}]   ;;  %s557_s1 = inlined_call_operand.vmem [shape: f32[1,128], index: 1, kind: input, shape index: {}]   ;;  %s558_s2 = inlined_call_operand.vmem [shape: f32[1,128], index: 2, kind: input, shape index: {}]   ;;  %s559_s3 = inlined_call_operand.hbm [shape: f32[128,128], index: 3, kind: input, shape index: {}]   ;;  %s560_s4 = inlined_call_operand.hbm [shape: f32[8,128], index: 4, kind: output, shape index: {}]  }
   0x1   :  { %10 = vsyncpa [#allocation6], 0 }
   0x2   :  { %11 = vsyncpa [#allocation4], 0  ;;  %s474_s15 = smov [#allocation2]   ;;  %s475_s17 = smov [#allocation5]  }
   0x3   :  { %s18_s16 = sshll.u32 %s474_s15, 4  ;;  %s31_s18 = sshll.u32 %s475_s17, 4  ;;  %s19_s16 = int_to_ptr.vmem [resolvable:$true] %s18_s16  ;;  %s507_s18 = int_to_ptr.vmem [resolvable:$true] %s31_s18 }
   0x4   :  { %s402_s21 = scalar_lea.hbm %s556_s0, 128 }
   0x5   :  { %p403_p0 = scmp.ne.s32.totalorder %s556_s0, %s402_s21  ;;  %p406_p1 = scmp.lt.u32.totalorder %s402_s21, %s556_s0 }
   0x7   :  { %p408_p2 = pnand %p406_p1, %p403_p0 }
   0x9   :  { %411 = shalt.err (!%p408_p2)
}
   0xa   :  { %s412_s26 = scalar_lea.vmem %s19_s16, 128  ;;  %p417_p4 = scmp.lt.s32.totalorder %s19_s16, %s19_s16 }
   0xb   :  { %p413_p3 = scmp.ne.s32.totalorder %s19_s16, %s412_s26  ;;  %p418_p5 = scmp.lt.s32.totalorder %s412_s26, %s412_s26 }
   0xd   :  { %p419_p6 = por %p418_p5, %p417_p4 }
   0xf   :  { %p420_p7 = pnand %p419_p6, %p413_p3 }
  0x11   :  { %423 = shalt.err (!%p420_p7)
}
  0x12   :  { %21 = dma.hbm_to_vmem [thread:$0]  %s556_s0, 128, %s19_s16, [#allocation3]  }
  0x13   :  { %s424_s5 = scalar_lea.hbm %s559_s3, 2048 }
  0x14   :  { %p425_p8 = scmp.ne.s32.totalorder %s559_s3, %s424_s5  ;;  %p428_p9 = scmp.lt.u32.totalorder %s424_s5, %s559_s3 }
  0x16   :  { %p430_p10 = pnand %p428_p9, %p425_p8 }
  0x18   :  { %433 = shalt.err (!%p430_p10)
}
  0x19   :  { %s434_s10 = scalar_lea.vmem %s507_s18, 2048  ;;  %p439_p12 = scmp.lt.s32.totalorder %s507_s18, %s507_s18 }
  0x1a   :  { %p435_p11 = scmp.ne.s32.totalorder %s507_s18, %s434_s10  ;;  %p440_p13 = scmp.lt.s32.totalorder %s434_s10, %s434_s10 }
  0x1c   :  { %p441_p0 = por %p440_p13, %p439_p12 }
  0x1e   :  { %p442_p1 = pnand %p441_p0, %p435_p11 }
  0x20   :  { %445 = shalt.err (!%p442_p1)
}
  0x21   :  { %s476_s0 = smov 128   ;;  %s477_s11 = smov 8  }
  0x22   :  { %37 = dma.hbm_to_vmem [thread:$0]  %s559_s3, 2048, %s507_s18, [#allocation6], %s476_s0, %s476_s0, %s477_s11  }
  0x23   :  { %468 = dma.done.wait [#allocation3], 128  }
  0x24   :  { %469 = vsyncadd [#allocation3], 4294967168 }
  0x25   :  { %470 = dma.done.wait [#allocation6], 2048  }
  0x26   :  { %471 = vsyncadd [#allocation6], 4294965248  ;;  %v478_v0 = vmov 0.0|0.0   ;;  %vm479_vm0 = vmmov 0   ;;  %v480_v1 = vmov 0.0   ;;  %v47_v2 = vld [vmem:[#allocation5] sm:$0xff] }
  0x27   :  { %344 = vmatprep.subr.bf16.mxu0 %v478_v0  ;;  %306 = vmatprep.mubr.msk.f32.mxu0 %vm479_vm0, %v480_v1  ;;  %v48_v3 = vld [vmem:[#allocation5 + $0x8] sm:$0xff]  ;;  %v49_v4 = vld [vmem:[#allocation5 + $0x10] sm:$0xff]  ;;  %v50_v6 = vld [vmem:[#allocation5 + $0x18] sm:$0xff]  ;;  %s481_s17 = smov [#allocation7]  }
  0x28   :  { %368 = vmatprep.subr.bf16.mxu1 %v478_v0  ;;  %341 = vmatprep.mubr.msk.f32.mxu1 %vm479_vm0, %v480_v1  ;;  %v345_v5 = vpack.c.bf16 %v48_v3, %v47_v2  ;;  %v348_v7 = vpack.c.bf16 %v50_v6, %v49_v4  ;;  %v51_v8 = vld [vmem:[#allocation5 + $0x20] sm:$0xff]  ;;  %v52_v9 = vld [vmem:[#allocation5 + $0x28] sm:$0xff]  ;;  %v53_v11 = vld [vmem:[#allocation5 + $0x30] sm:$0xff]  ;;  %s228_s18 = sshll.u32 %s481_s17, 4  ;;  %s229_s18 = int_to_ptr.vmem [resolvable:$true] %s228_s18 }
  0x29   :  { %v351_v10 = vpack.c.bf16 %v52_v9, %v51_v8  ;;  %v54_v12 = vld [vmem:[#allocation5 + $0x38] sm:$0xff]  ;;  %v55_v14 = vld [vmem:[#allocation5 + $0x40] sm:$0xff]  ;;  %v56_v15 = vld [vmem:[#allocation5 + $0x48] sm:$0xff]  ;;  %s446_s19 = scalar_lea.vmem %s229_s18, 128  ;;  %p451_p3 = scmp.lt.s32.totalorder %s229_s18, %s229_s18 }
  0x2a   :  { %346 = vmatpush3.bf16.msra.mxu0 %v345_v5  ;;  %370 = vmatpush3.bf16.msra.mxu1 %v345_v5  ;;  %v354_v13 = vpack.c.bf16 %v54_v12, %v53_v11  ;;  %v357_v16 = vpack.c.bf16 %v56_v15, %v55_v14  ;;  %v57_v17 = vld [vmem:[#allocation5 + $0x50] sm:$0xff]  ;;  %v58_v18 = vld [vmem:[#allocation5 + $0x58] sm:$0xff]  ;;  %v59_v20 = vld [vmem:[#allocation5 + $0x60] sm:$0xff]  ;;  %p447_p2 = scmp.ne.s32.totalorder %s229_s18, %s446_s19  ;;  %p452_p4 = scmp.lt.s32.totalorder %s446_s19, %s446_s19 }
  0x2b   :  { %347 = vmatprep.subr.bf16.mxu0 %v478_v0  ;;  %371 = vmatprep.subr.bf16.mxu1 %v478_v0  ;;  %v360_v19 = vpack.c.bf16 %v58_v18, %v57_v17  ;;  %v60_v21 = vld [vmem:[#allocation5 + $0x68] sm:$0xff]  ;;  %v61_v23 = vld [vmem:[#allocation5 + $0x70] sm:$0xff]  ;;  %v62_v24 = vld [vmem:[#allocation5 + $0x78] sm:$0xff] }
  0x2c   :  { %v363_v22 = vpack.c.bf16 %v60_v21, %v59_v20  ;;  %v366_v25 = vpack.c.bf16 %v62_v24, %v61_v23  ;;  %v44_v26 = vld [vmem:[#allocation2] sm:$0xff]  ;;  %p453_p5 = por %p452_p4, %p451_p3 }
  0x2d   :  { %v238_v35 = vld [vmem:[%s557_s1] ss:$0 sm:$0xff] }
  0x2e   :  { %349 = vmatpush3.bf16.msra.mxu0 %v348_v7  ;;  %373 = vmatpush3.bf16.msra.mxu1 %v348_v7  ;;  %v239_v37 = vld [vmem:[%s558_s2] ss:$0 sm:$0xff]  ;;  %p454_p6 = pnand %p453_p5, %p447_p2 }
  0x2f   :  { %350 = vmatprep.subr.bf16.mxu0 %v478_v0  ;;  %374 = vmatprep.subr.bf16.mxu1 %v478_v0 }
  0x32   :  { %352 = vmatpush3.bf16.msra.mxu0 %v351_v10  ;;  %376 = vmatpush3.bf16.msra.mxu1 %v351_v10 }
  0x33   :  { %353 = vmatprep.subr.bf16.mxu0 %v478_v0  ;;  %377 = vmatprep.subr.bf16.mxu1 %v478_v0 }
  0x36   :  { %355 = vmatpush3.bf16.msra.mxu0 %v354_v13  ;;  %379 = vmatpush3.bf16.msra.mxu1 %v354_v13 }
  0x37   :  { %356 = vmatprep.subr.bf16.mxu0 %v478_v0  ;;  %380 = vmatprep.subr.bf16.mxu1 %v478_v0 }
  0x3a   :  { %358 = vmatpush3.bf16.msra.mxu0 %v357_v16  ;;  %382 = vmatpush3.bf16.msra.mxu1 %v357_v16 }
  0x3b   :  { %359 = vmatprep.subr.bf16.mxu0 %v478_v0  ;;  %383 = vmatprep.subr.bf16.mxu1 %v478_v0 }
  0x3e   :  { %361 = vmatpush3.bf16.msra.mxu0 %v360_v19  ;;  %385 = vmatpush3.bf16.msra.mxu1 %v360_v19 }
  0x3f   :  { %362 = vmatprep.subr.bf16.mxu0 %v478_v0  ;;  %386 = vmatprep.subr.bf16.mxu1 %v478_v0 }
  0x42   :  { %364 = vmatpush3.bf16.msra.mxu0 %v363_v22  ;;  %388 = vmatpush3.bf16.msra.mxu1 %v363_v22 }
  0x43   :  { %365 = vmatprep.subr.bf16.mxu0 %v478_v0  ;;  %389 = vmatprep.subr.bf16.mxu1 %v478_v0 }
  0x46   :  { %367 = vmatpush3.bf16.msra.mxu0 %v366_v25  ;;  %391 = vmatpush3.bf16.msra.mxu1 %v366_v25 }
  0x49   :  { %307 = vmatmul.mubr.f32.vlgmr.msra.gmra.mrb[0].mxu0 %v44_v26 }
 0x11c   :  { %v129_v27 = vpop.f32.mrb[0].mxu0 }
 0x11d   :  { %v133_v28 = vsub.f32 %v44_v26, %v129_v27  ;;  %v308_v29 = vpop.f32.mrb[1].mxu0 }
 0x11f   :  { %v134_v30 = vmul.f32 %v133_v28, %v133_v28 }
 0x121   :  { %342 = vmatmul.mubr.f32.vlgmr.msra.gmra.mrb[0].mxu1 %v134_v30 }
 0x1f4   :  { %v201_v31 = vpop.f32.mrb[0].mxu1 }
 0x1f5   :  { %v202_v32 = vadd.f32 1e-05, %v201_v31  ;;  %v343_v33 = vpop.f32.mrb[1].mxu1 }
 0x1f7   :  { %400 = vrsqrt.f32 %v202_v32 }
 0x201   :  { %v401_v34 = vpop.eup %400 }
 0x202   :  { %v206_v36 = vmul.f32 %v401_v34, %v133_v28 }
 0x204   :  { %v213_v38 = vmul.f32 %v238_v35, %v206_v36 }
 0x206   :  { %v220_v39 = vadd.f32 %v239_v37, %v213_v38 }
 0x208   :  { %221 = vst [vmem:[#allocation7] sm:$0xff] %v220_v39 }
 0x209   :  { %457 = shalt.err (!%p454_p6)
}
 0x20a   :  { %s458_s21 = scalar_lea.hbm %s560_s4, 128 }
 0x20b   :  { %p459_p7 = scmp.ne.s32.totalorder %s560_s4, %s458_s21  ;;  %p462_p8 = scmp.lt.u32.totalorder %s458_s21, %s560_s4 }
 0x20d   :  { %p464_p9 = pnand %p462_p8, %p459_p7 }
 0x20f   :  { %467 = shalt.err (!%p464_p9)
}
 0x210   :  { %231 = dma.vmem_to_hbm [thread:$0]  %s229_s18, 128, %s560_s4, [#allocation4]  }
 0x211   :  { %472 = dma.done.wait [#allocation4], 128  }
 0x212   :  { %473 = vsyncadd [#allocation4], 4294967168 }
 0x213   :  { %235 = vsyncpa [#allocation3], 1 }
 0x214   :  { %236 = vsyncpa [#allocation6], 1 }
 0x215   :  { %237 = vsyncpa [#allocation4], 1 }

</bundles_post_ra>
